<compile_context>
chip_gen: v7x
topology: tpu7x:2x2x1
jax: 0.10.0
libtpu: 0.0.40
codegen_flags: <defaults>
</compile_context>

<pallas_src>
import math

import jax
import jax.numpy as jnp
from jax.experimental import pallas as pl
from jax.experimental.pallas import tpu as pltpu


_MAX_TILE = 512                 # elements per transposed axis per VMEM tile
_MIN_PALLAS_BYTES = 64 * 1024   # below this, XLA's native transpose wins


def _transpose_tile_kernel(x_ref, o_ref):
    # x_ref: (t_r, t_c) tile of the (R, C) plane; o_ref: (t_c, t_r) tile of
    # the (C, R) output. Clean 2-D tile transpose -> single XLU pass, with
    # unmasked lane-dense stores whenever t_r is a multiple of 128.
    o_ref[...] = x_ref[...].T


def _pick_tile(dim, max_tile=_MAX_TILE):
    """Pick a tile size: full extent if small enough, else the largest
    128-aligned divisor (unmasked, evenly divided blocks), else `max_tile`
    with a masked partial edge block (Pallas handles the remainder)."""
    if dim <= max_tile:
        return dim
    for t in range(max_tile, 127, -128):   # 512, 384, 256, 128
        if dim % t == 0:
            return t
    return max_tile


def _batched_transpose_pallas(x):
    """(B, R, C) -> (B, C, R) as a tiled, pipelined Pallas kernel."""
    B, R, C = x.shape
    t_r = _pick_tile(R)
    t_c = _pick_tile(C)
    grid = (B, pl.cdiv(R, t_r), pl.cdiv(C, t_c))
    itemsize = x.dtype.itemsize

    return pl.pallas_call(
        _transpose_tile_kernel,
        out_shape=jax.ShapeDtypeStruct((B, C, R), x.dtype),
        grid=grid,
        # Batch dim squeezed (None). Tile dims are either full-extent or
        # multiples of 128, so the (8,128) rule holds for the input tile
        # (t_r, t_c) AND the transposed output tile (t_c, t_r).
        in_specs=[pl.BlockSpec((None, t_r, t_c), lambda b, i, j: (b, i, j))],
        out_specs=pl.BlockSpec((None, t_c, t_r), lambda b, i, j: (b, j, i)),
        compiler_params=pltpu.CompilerParams(
            # Every grid point writes a distinct output block -> fully
            # parallel. Lets v7x shard the grid across its 2 TensorCores;
            # neutral on single-core v5e/v6e.
            dimension_semantics=("parallel", "parallel", "parallel"),
            # Tiles are <= 1 MiB each; in+out double-buffered stays ~4 MiB,
            # well under the scoped default on every generation (incl. v7x's
            # 64 MiB physical VMEM). Set explicitly anyway.
            vmem_limit_bytes=32 * 1024 * 1024,
        ),
        # Pure relayout: 0 FLOPs, one read + one write of the whole tensor.
        # Helps the XLA scheduler overlap this mem-bound call with neighbors.
        cost_estimate=pl.CostEstimate(
            flops=0, transcendentals=0, bytes_accessed=2 * x.size * itemsize
        ),
    )(x)


def _batched_transpose_plan(shape, dims):
    """If permute(x, dims) is equivalent to
         reshape(x, (B, R, C)).transpose(0, 2, 1).reshape(out_shape)
    return (B, R, C); otherwise return None."""
    ndim = len(shape)
    keep = [d for d in range(ndim) if shape[d] != 1]
    if len(keep) < 2:
        return None
    pos = {d: i for i, d in enumerate(keep)}
    kshape = [shape[d] for d in keep]
    kperm = [pos[d] for d in dims if shape[d] != 1]   # output order of kept axes
    inv = [0] * len(kperm)
    for out_i, in_ax in enumerate(kperm):
        inv[in_ax] = out_i
    # Coalesce input axes that stay adjacent (same order) in the output.
    groups = [[0]]
    for ax in range(1, len(kshape)):
        if inv[ax] == inv[groups[-1][-1]] + 1:
            groups[-1].append(ax)
        else:
            groups.append([ax])
    gsizes = [math.prod(kshape[a] for a in g) for g in groups]
    order = tuple(sorted(range(len(groups)), key=lambda g: inv[groups[g][0]]))
    if order == (1, 0):
        return 1, gsizes[0], gsizes[1]
    if order == (0, 2, 1):
        return gsizes[0], gsizes[1], gsizes[2]
    return None


def permute_pallas(x, dims):
    """Pallas equivalent of torch.permute(x, dims)."""
    ndim = x.ndim
    dims = tuple(int(d) % ndim for d in dims)
    assert sorted(dims) == list(range(ndim)), "dims must be a permutation"
    out_shape = tuple(x.shape[d] for d in dims)

    # Fast path: identity permutation.
    if dims == tuple(range(ndim)):
        return x

    # Fast path: only singleton dims move -> pure reshape (no data movement).
    kept_in = [d for d in range(ndim) if x.shape[d] != 1]
    kept_out = [d for d in dims if x.shape[d] != 1]
    if kept_in == kept_out:
        return jnp.reshape(x, out_shape)

    # Fast path: tiny tensors -- launch + per-grid-step overhead dominates;
    # XLA's native transpose is faster on every TPU generation.
    if x.size * x.dtype.itemsize < _MIN_PALLAS_BYTES:
        return jnp.transpose(x, dims)

    plan = _batched_transpose_plan(x.shape, dims)
    if plan is None:
        # TODO(synk): permutations that don't coalesce to a batched 2-D
        # transpose (e.g. a full axis reversal) fall back to XLA's transpose.
        return jnp.transpose(x, dims)

    b, r, c = plan
    y = _batched_transpose_pallas(jnp.reshape(x, (b, r, c)))
    return jnp.reshape(y, out_shape)


class Permute:
    """Mirror of the PyTorch module: returns x with dimensions permuted."""

    def __init__(self, dims):
        self.dims = tuple(dims)

    def __call__(self, x):
        return permute_pallas(x, self.dims)


if __name__ == "__main__":
    key = jax.random.PRNGKey(0)
    k0, k1, k2 = jax.random.split(key, 3)

    mod = Permute([0, 2, 3, 1])      # NCHW -> NHWC
    mod_back = Permute([0, 3, 1, 2])  # NHWC -> NCHW

    # 1) Tiny demo shape (as in the original test): hits the XLA fast path.
    x_small = jax.random.normal(k0, (2, 4, 16, 16), dtype=jnp.float32)
    y_small = jax.block_until_ready(mod(x_small))
    ref_small = jnp.transpose(x_small, (0, 2, 3, 1))
    assert y_small.shape == ref_small.shape == (2, 16, 16, 4)
    assert y_small.dtype == x_small.dtype
    assert bool(jnp.array_equal(y_small, ref_small))
    assert bool(jnp.array_equal(jax.block_until_ready(mod_back(y_small)), x_small))

    # 2) 128-aligned ConvNeXt-like shape: exercises the tiled Pallas kernel
    #    with evenly divided, lane-dense blocks (both directions).
    x_big = jax.random.normal(k1, (2, 256, 32, 32), dtype=jnp.float32)
    y_big = jax.block_until_ready(mod(x_big))
    assert y_big.shape == (2, 32, 32, 256)
    assert bool(jnp.array_equal(y_big, jnp.transpose(x_big, (0, 2, 3, 1))))
    x_back = jax.block_until_ready(mod_back(y_big))
    assert bool(jnp.array_equal(x_back, x_big))

    # 3) Un-aligned, lane-sparse ConvNeXt-stem-like shape (C=96, H*W=3136):
    #    exercises full-extent channel tiles + masked partial edge blocks.
    x_stem = jax.random.normal(k2, (2, 96, 56, 56), dtype=jnp.float32)
    y_stem = jax.block_until_ready(mod(x_stem))
    assert y_stem.shape == (2, 56, 56, 96)
    assert bool(jnp.array_equal(y_stem, jnp.transpose(x_stem, (0, 2, 3, 1))))

    print("KERNEL_OK")
</pallas_src>

<mosaic_0001>
module attributes {stable_mosaic.version = 11 : i64} {
  func.func @_transpose_tile_kernel(%arg0: i32, %arg1: i32, %arg2: i32, %arg3: memref<1x256x512xf32, #tpu.memory_space<vmem>>, %arg4: memref<1x512x256xf32, #tpu.memory_space<vmem>>) attributes {dimension_semantics = [#tpu.dimension_semantics<parallel>, #tpu.dimension_semantics<parallel>, #tpu.dimension_semantics<parallel>], iteration_bounds = array<i64: 2, 1, 2>, scalar_prefetch = 0 : i64, scratch_operands = 0 : i64, tpu.core_type = #tpu.core_type<tc>, window_params = [{transform_indices = @transform_0, window_bounds = array<i64: 1, 256, 512>}, {transform_indices = @transform_1, window_bounds = array<i64: 1, 512, 256>}]} {
    %c0 = arith.constant 0 : index
    %c0_0 = arith.constant 0 : index
    %c0_1 = arith.constant 0 : index
    %0 = vector.load %arg3[%c0, %c0_0, %c0_1] : memref<1x256x512xf32, #tpu.memory_space<vmem>>, vector<1x256x512xf32>
    %1 = vector.shape_cast %0 : vector<1x256x512xf32> to vector<256x512xf32>
    %2 = tpu.transpose %1, [1, 0] : vector<256x512xf32> -> vector<512x256xf32>
    %c0_2 = arith.constant 0 : index
    %c0_3 = arith.constant 0 : index
    %c0_4 = arith.constant 0 : index
    %3 = vector.load %arg4[%c0_2, %c0_3, %c0_4] : memref<1x512x256xf32, #tpu.memory_space<vmem>>, vector<1x512x256xf32>
    %4 = vector.shape_cast %3 : vector<1x512x256xf32> to vector<512x256xf32>
    %5 = vector.shape_cast %2 : vector<512x256xf32> to vector<1x512x256xf32>
    tpu.vector_store %arg4[%c0_2, %c0_3, %c0_4], %5 {strides = array<i32>} : memref<1x512x256xf32, #tpu.memory_space<vmem>>, vector<1x512x256xf32>,
    return
  }
  func.func @transform_0(%arg0: i32, %arg1: i32, %arg2: i32) -> (i32, i32, i32) {
    %c0_i32 = arith.constant 0 : i32
    return %arg0, %arg1, %arg2 : i32, i32, i32
  }
  func.func @transform_1(%arg0: i32, %arg1: i32, %arg2: i32) -> (i32, i32, i32) {
    %c0_i32 = arith.constant 0 : i32
    return %arg0, %arg2, %arg1 : i32, i32, i32
  }
}

</mosaic_0001>

<bundles_post_ra>
// kernel: tpu_custom_call.1
= control target key start
LH: loop header
LB: loop body
LE: loop exit
PB: predicated region body
PF: predicated region fallthrough
CT: control target
= control target key end

     0   :  { %6 = vsyncpa [#allocation3], 0  ;;  %s1510_s0 = inlined_call_operand.hbm [shape: f32[2,256,1024], index: 0, kind: input, shape index: {}]   ;;  %s1511_s1 = inlined_call_operand.hbm [shape: f32[2,1024,256], index: 1, kind: output, shape index: {}]  }
   0x1   :  { %8 = vsyncpa [#allocation3 + $0x1], 0 }
   0x2   :  { %9 = vsyncpa [#allocation4], 0 }
   0x3   :  { %11 = vsyncpa [#allocation4 + $0x1], 0  ;;  %s1048_s6 = smov 0   ;;  %s1050_s7 = smov 0  }
   0x4   :  { %s1052_s8 = smov 0   ;;  %s1054_s9 = smov 0  }
   0x5   :  { %s1056_s10 = smov 0   ;;  %s1058_s11 = smov 0  }
   0x6   :  { %s1060_s12 = smov 0   ;;  %s1062_s13 = smov 0  }
   0x7 LB: > { %s799_s14 = sadd.s32 4294967295, %s1029_s13   ;;  %s800_s15 = sadd.s32 4294967294, %s1029_s13   ;;  %s1029_s13 = sphi %s1062_s13, %s17_s13   ;;  %s1025_s12 = sphi %s1060_s12, %s1527_s12   ;;  %s1021_s11 = sphi %s1058_s11, %s1526_s11   ;;  %s1017_s10 = sphi %s1056_s10, %s1525_s10   ;;  %s1013_s9 = sphi %s1054_s9, %s1524_s9   ;;  %s1009_s8 = sphi %s1052_s8, %s1523_s8   ;;  %s1005_s7 = sphi %s1050_s7, %s1522_s7   ;;  %s1001_s6 = sphi %s1048_s6, %s1521_s6  }
   0x8   : > { %s29_s16 = sadd.s32 1, %s1021_s11  ;;  %s36_s17 = sadd.s32 1, %s1025_s12 }
   0x9   : > { %p30_p0 = scmp.ge.s32.totalorder %s29_s16, 2  ;;  %s47_s18 = sadd.s32 1, %s1009_s8 }
   0xa   : > { %p54_p1 = scmp.ne.s32.totalorder %s1009_s8, %s1005_s7  ;;  %p55_p2 = scmp.eq.s32.totalorder %s1029_s13, 0 }
   0xb   : > { %s1529_s16 = smov (%p30_p0, %s29_s16), 0  ;;  %s1531_s17 = smov (!%p30_p0, %s36_s17), %s1025_s12 }
   0xc   : > { %s43_s19 = ssub.s32 %s1021_s11, %s1529_s16  ;;  %p1101_p3 = por %p55_p2, %p54_p1 }
   0xd   : > { %p38_p4 = scmp.ge.s32.totalorder %s1531_s17, 2  ;;  %p60_p5 = scmp.ne.s32.totalorder %s1005_s7, %s1001_s6 }
   0xe   : > { %p61_p6 = scmp.eq.s32.totalorder %s799_s14, 0  ;;  %p88_p7 = scmp.eq.s32.totalorder %s799_s14, 3 }
   0xf   : > { %s1533_s17 = smov (%p38_p4, %s1531_s17), 0  ;;  %p94_p10 = scmp.eq.s32.totalorder %s800_s15, 3 }
  0x10   : > { %p1109_p8 = por %p61_p6, %p60_p5  ;;  %p1113_p9 = por %p88_p7, %p54_p1 }
  0x11   : > { %s40_s23 = ssub.s32 %s1025_s12, %s1533_s17  ;;  %p1119_p12 = por %p94_p10, %p60_p5 }
  0x12   : > { %s1515_s22 = scalar_select %p1113_p9, 1, 0 }
  0x13   : > { %s44_s24 = sor.u32 %s43_s19, %s40_s23  ;;  %p830_p13 = scmp.lt.s32.totalorder %s1029_s13, 4 }
  0x14   : > { %p45_p11 = scmp.eq.s32.totalorder %s44_s24, 0  ;;  %s114_s26 = sand.u32 1, %s1009_s8  }
  0x15   : > { %s1516_s25 = scalar_select %p1119_p12, 1, 0 }
  0x16   : > { %s1126_s27 = scalar_select %p45_p11, %s1009_s8, %s47_s18  }
  0x17   : > { %s803_s28 = sshll.u32 %s114_s26, 10  ;;  %s804_s29 = sshll.u32 %s1021_s11, 2 }
  0x18   : > { %s805_s30 = sshll.u32 %s1025_s12, 8  ;;  %s118_s2 = scalar_lea.vmem [#allocation2], %s803_s28 }
  0x19   : > { %s130_s3 = sshll.u32 %s118_s2, 4  ;;  %s127_s4 = sadd.s32 %s805_s30, %s804_s29  ;;  %s1130_s3 = int_to_ptr.vmem [resolvable:$true] %s130_s3 }
  0x1a   : > { %s806_s5 = sshll.u32 %s127_s4, 7  ;;  %p1134_p0 = pnand %p830_p13, %p1101_p3 }
  0x1b   : > { %s1141_s18 = scalar_lea.hbm %s1510_s0, %s806_s5  ;;  %s1144_s23 = scalar_lea.sflag [#allocation3], %s114_s26 }
  0x1c   : > { %s901_s24 = scalar_lea.hbm %s1141_s18, 16384  ;;  %p903_p3 = pneg %p1134_p0 }
  0x1d   : > { %p902_p2 = scmp.ne.s32.totalorder %s1141_s18, %s901_s24  ;;  %s906_s29 = scalar_lea.hbm %s1510_s0, 65536 }
  0x1e   : > { %p907_p6 = scmp.lt.u32.totalorder %s1141_s18, %s1510_s0  ;;  %p908_p7 = scmp.lt.u32.totalorder %s906_s29, %s901_s24 }
  0x1f   : > { %p904_p4 = pnand %p903_p3, %p902_p2  ;;  %p910_p11 = scmp.lt.u32.totalorder %s901_s24, %s1141_s18 }
  0x20   : > { %p909_p10 = por %p908_p7, %p907_p6 }
  0x21   : > { %p905_p5 = pneg %p904_p4 }
  0x22   : > { %p911_p13 = por %p910_p11, %p909_p10 }
  0x24   : > { %p912_p1 = pnand %p911_p13, %p905_p5 }
  0x26   : > { %915 = shalt.err (!%p912_p1)
}
  0x27   : > { %s916_s26 = scalar_lea.vmem %s1130_s3, 16384  ;;  %s1031_s4 = smov [#allocation2]  }
  0x28   : > { %p917_p2 = scmp.ne.s32.totalorder %s1130_s3, %s916_s26  ;;  %s921_s5 = sshll.u32 %s1031_s4, 4  ;;  %s922_s5 = int_to_ptr.vmem [resolvable:$false] %s921_s5 }
  0x29   : > { %s923_s15 = scalar_lea.vmem %s922_s5, 32768  ;;  %p924_p9 = scmp.lt.s32.totalorder %s1130_s3, %s922_s5 }
  0x2a   : > { %p919_p4 = pnand %p917_p2, %p903_p3  ;;  %p925_p6 = scmp.lt.s32.totalorder %s923_s15, %s916_s26 }
  0x2c   : > { %p920_p12 = pneg %p919_p4  ;;  %p926_p7 = por %p925_p6, %p924_p9 }
  0x2e   : > { %p927_p10 = pnand %p926_p7, %p920_p12 }
  0x30   : > { %930 = shalt.err (!%p927_p10)
}
  0x31   : > { %s1032_s19 = smov 1024   ;;  %s1033_s24 = smov 512  }
  0x32   : > { %s1034_s20 = smov 32   ;;  %p138_p1 = scmp.lt.s32.totalorder %s1029_s13, 5 }
  0x33   : > { %825 = dma.hbm_to_vmem [thread:$0]  (!%p1134_p0), %s1141_s18, 16384, %s1130_s3, %s1144_s23, %s1032_s19, %s1033_s24, %s1034_s20  }
  0x34   : > { %p1518_p3 = scmp.ge.s32.totalorder %s1029_s13, 1 }
  0x36   : > { %p139_p5 = pnand %p1518_p3, %p138_p1 }
  0x37   : > { %s1176_s28 = sand.u32 (!%p139_p5), 1, %s1005_s7  }
  0x38   : > { %142 = sbr.rel (%p139_p5) target bundleno = 461 (0x1cd), region = 24  ;;  %s808_s29 = sshll.u32 (!%p139_p5), %s1176_s28, 10 }
  0x39   : > { %s145_s30 = scalar_lea.sflag (!%p139_p5), [#allocation3], %s1176_s28  ;;  %s1182_s2 = scalar_lea.vmem (!%p139_p5), [#allocation2], %s808_s29 }
  0x3f   : > { %992 = dma.done.wait (%p1109_p8), %s145_s30, 16384  }
  0x40   : > { %994 = vsyncadd (%p1109_p8), %s145_s30, 4294950912  ;;  %v172_v0 = vld [vmem:[%s1182_s2 + $0x8] sm:$0xff]  ;;  %v171_v1 = vld [vmem:[%s1182_s2] sm:$0xff]  ;;  %s1256_s21 = scalar_lea.vmem [#allocation5], %s808_s29  ;;  %s817_s3 = sshll.u32 %s1013_s9, 7 }
  0x41   : > { %331 = vxpose.xlu1.b32.start [1/16] %v172_v0, 128  ;;  %299 = vxpose.xlu0.b32.start [1/16] %v171_v1, 128  ;;  %v176_v2 = vld [vmem:[%s1182_s2 + $0x28] sm:$0xff]  ;;  %v175_v3 = vld [vmem:[%s1182_s2 + $0x20] sm:$0xff]  ;;  %v174_v32 = vld [vmem:[%s1182_s2 + $0x18] sm:$0xff]  ;;  %s813_s14 = sshll.u32 %s1017_s10, 8  ;;  %s702_s26 = sshll.u32 %s1256_s21, 4  ;;  %s1454_s26 = int_to_ptr.vmem [resolvable:$true] %s702_s26 }
  0x42   : > { %v180_v4 = vld [vmem:[%s1182_s2 + $0x48] sm:$0xff]  ;;  %v179_v5 = vld [vmem:[%s1182_s2 + $0x40] sm:$0xff]  ;;  %v173_v33 = vld [vmem:[%s1182_s2 + $0x10] sm:$0xff]  ;;  %s699_s18 = sadd.s32 %s817_s3, %s813_s14  ;;  %s684_s10 = scalar_lea.sflag [#allocation4], %s1176_s28 }
  0x43   : > { %v184_v6 = vld [vmem:[%s1182_s2 + $0x68] sm:$0xff]  ;;  %v183_v7 = vld [vmem:[%s1182_s2 + $0x60] sm:$0xff]  ;;  %v178_v34 = vld [vmem:[%s1182_s2 + $0x38] sm:$0xff]  ;;  %s814_s23 = sshll.u32 %s699_s18, 7  ;;  %s931_s15 = scalar_lea.vmem %s1454_s26, 16384 }
  0x44   : > { %v188_v8 = vld [vmem:[%s1182_s2 + $0x88] sm:$0xff]  ;;  %v187_v9 = vld [vmem:[%s1182_s2 + $0x80] sm:$0xff]  ;;  %v177_v35 = vld [vmem:[%s1182_s2 + $0x30] sm:$0xff]  ;;  %s1452_s9 = scalar_lea.hbm %s1511_s1, %s814_s23  ;;  %p932_p8 = scmp.ne.s32.totalorder %s1454_s26, %s931_s15 }
  0x45   : > { %332 = vxpose.xlu1.b32.cont [2/16] %v176_v2, 128  ;;  %300 = vxpose.xlu0.b32.cont [2/16] %v175_v3, 128  ;;  %v192_v10 = vld [vmem:[%s1182_s2 + $0xa8] sm:$0xff]  ;;  %v191_v11 = vld [vmem:[%s1182_s2 + $0xa0] sm:$0xff]  ;;  %v182_v36 = vld [vmem:[%s1182_s2 + $0x58] sm:$0xff]  ;;  %p1519_p9 = scmp.ne.s32.totalorder %s1515_s22, 0  ;;  %s1035_s19 = smov [#allocation5]  }
  0x46   : > { %v196_v12 = vld [vmem:[%s1182_s2 + $0xc8] sm:$0xff]  ;;  %v195_v13 = vld [vmem:[%s1182_s2 + $0xc0] sm:$0xff]  ;;  %v181_v37 = vld [vmem:[%s1182_s2 + $0x50] sm:$0xff]  ;;  %s935_s24 = sshll.u32 %s1035_s19, 4  ;;  %s936_s24 = int_to_ptr.vmem [resolvable:$false] %s935_s24 }
  0x47   : > { %v200_v14 = vld [vmem:[%s1182_s2 + $0xe8] sm:$0xff]  ;;  %v199_v15 = vld [vmem:[%s1182_s2 + $0xe0] sm:$0xff]  ;;  %v186_v38 = vld [vmem:[%s1182_s2 + $0x78] sm:$0xff]  ;;  %p933_p12 = pnand %p932_p8, %p1519_p9  ;;  %s937_s20 = scalar_lea.vmem %s936_s24, 32768 }
  0x48   : > { %v204_v16 = vld [vmem:[%s1182_s2 + $0x108] sm:$0xff]  ;;  %v203_v17 = vld [vmem:[%s1182_s2 + $0x100] sm:$0xff]  ;;  %v185_v39 = vld [vmem:[%s1182_s2 + $0x70] sm:$0xff]  ;;  %p938_p11 = scmp.lt.s32.totalorder %s1454_s26, %s936_s24  ;;  %p939_p13 = scmp.lt.s32.totalorder %s937_s20, %s931_s15 }
  0x49   : > { %333 = vxpose.xlu1.b32.cont [3/16] %v180_v4, 128  ;;  %301 = vxpose.xlu0.b32.cont [3/16] %v179_v5, 128  ;;  %v208_v18 = vld [vmem:[%s1182_s2 + $0x128] sm:$0xff]  ;;  %v207_v19 = vld [vmem:[%s1182_s2 + $0x120] sm:$0xff]  ;;  %v190_v40 = vld [vmem:[%s1182_s2 + $0x98] sm:$0xff]  ;;  %p934_p0 = pneg %p933_p12 }
  0x4a   : > { %v212_v20 = vld [vmem:[%s1182_s2 + $0x148] sm:$0xff]  ;;  %v211_v21 = vld [vmem:[%s1182_s2 + $0x140] sm:$0xff]  ;;  %v189_v41 = vld [vmem:[%s1182_s2 + $0x90] sm:$0xff]  ;;  %p940_p2 = por %p939_p13, %p938_p11 }
  0x4b   : > { %v216_v22 = vld [vmem:[%s1182_s2 + $0x168] sm:$0xff]  ;;  %v215_v23 = vld [vmem:[%s1182_s2 + $0x160] sm:$0xff]  ;;  %v194_v42 = vld [vmem:[%s1182_s2 + $0xb8] sm:$0xff] }
  0x4c   : > { %v220_v24 = vld [vmem:[%s1182_s2 + $0x188] sm:$0xff]  ;;  %v219_v25 = vld [vmem:[%s1182_s2 + $0x180] sm:$0xff]  ;;  %v193_v43 = vld [vmem:[%s1182_s2 + $0xb0] sm:$0xff]  ;;  %p941_p4 = pnand %p940_p2, %p934_p0 }
  0x4d   : > { %334 = vxpose.xlu1.b32.cont [4/16] %v184_v6, 128  ;;  %302 = vxpose.xlu0.b32.cont [4/16] %v183_v7, 128  ;;  %v224_v26 = vld [vmem:[%s1182_s2 + $0x1a8] sm:$0xff]  ;;  %v223_v27 = vld [vmem:[%s1182_s2 + $0x1a0] sm:$0xff]  ;;  %v198_v44 = vld [vmem:[%s1182_s2 + $0xd8] sm:$0xff] }
  0x4e   : > { %v228_v28 = vld [vmem:[%s1182_s2 + $0x1c8] sm:$0xff]  ;;  %v227_v29 = vld [vmem:[%s1182_s2 + $0x1c0] sm:$0xff]  ;;  %v197_v45 = vld [vmem:[%s1182_s2 + $0xd0] sm:$0xff] }
  0x4f   : > { %v232_v30 = vld [vmem:[%s1182_s2 + $0x1e8] sm:$0xff]  ;;  %v231_v31 = vld [vmem:[%s1182_s2 + $0x1e0] sm:$0xff]  ;;  %v202_v46 = vld [vmem:[%s1182_s2 + $0xf8] sm:$0xff] }
  0x50   : > { %v201_v47 = vld [vmem:[%s1182_s2 + $0xf0] sm:$0xff]  ;;  %v206_v48 = vld [vmem:[%s1182_s2 + $0x118] sm:$0xff]  ;;  %v236_v0 = vld [vmem:[%s1182_s2 + $0x208] sm:$0xff] }
  0x51   : > { %335 = vxpose.xlu1.b32.cont [5/16] %v188_v8, 128  ;;  %303 = vxpose.xlu0.b32.cont [5/16] %v187_v9, 128  ;;  %v205_v49 = vld [vmem:[%s1182_s2 + $0x110] sm:$0xff]  ;;  %v210_v50 = vld [vmem:[%s1182_s2 + $0x138] sm:$0xff]  ;;  %v235_v1 = vld [vmem:[%s1182_s2 + $0x200] sm:$0xff] }
  0x52   : > { %v209_v51 = vld [vmem:[%s1182_s2 + $0x130] sm:$0xff]  ;;  %v214_v52 = vld [vmem:[%s1182_s2 + $0x158] sm:$0xff]  ;;  %v240_v4 = vld [vmem:[%s1182_s2 + $0x228] sm:$0xff] }
  0x53   : > { %v213_v53 = vld [vmem:[%s1182_s2 + $0x150] sm:$0xff]  ;;  %v218_v54 = vld [vmem:[%s1182_s2 + $0x178] sm:$0xff]  ;;  %v239_v5 = vld [vmem:[%s1182_s2 + $0x220] sm:$0xff] }
  0x54   : > { %v217_v55 = vld [vmem:[%s1182_s2 + $0x170] sm:$0xff]  ;;  %v222_v56 = vld [vmem:[%s1182_s2 + $0x198] sm:$0xff]  ;;  %v244_v8 = vld [vmem:[%s1182_s2 + $0x248] sm:$0xff] }
  0x55   : > { %336 = vxpose.xlu1.b32.cont [6/16] %v192_v10, 128  ;;  %304 = vxpose.xlu0.b32.cont [6/16] %v191_v11, 128  ;;  %v221_v57 = vld [vmem:[%s1182_s2 + $0x190] sm:$0xff]  ;;  %v226_v58 = vld [vmem:[%s1182_s2 + $0x1b8] sm:$0xff]  ;;  %v243_v9 = vld [vmem:[%s1182_s2 + $0x240] sm:$0xff] }
  0x56   : > { %v225_v59 = vld [vmem:[%s1182_s2 + $0x1b0] sm:$0xff]  ;;  %v230_v60 = vld [vmem:[%s1182_s2 + $0x1d8] sm:$0xff] }
  0x57   : > { %v229_v61 = vld [vmem:[%s1182_s2 + $0x1d0] sm:$0xff]  ;;  %v234_v62 = vld [vmem:[%s1182_s2 + $0x1f8] sm:$0xff] }
  0x58   : > { %v233_v63 = vld [vmem:[%s1182_s2 + $0x1f0] sm:$0xff] }
  0x59   : > { %337 = vxpose.xlu1.b32.cont [7/16] %v196_v12, 128  ;;  %305 = vxpose.xlu0.b32.cont [7/16] %v195_v13, 128  ;;  %v248_v12 = vld [vmem:[%s1182_s2 + $0x268] sm:$0xff]  ;;  %v247_v13 = vld [vmem:[%s1182_s2 + $0x260] sm:$0xff] }
  0x5d   : > { %338 = vxpose.xlu1.b32.cont [8/16] %v200_v14, 128  ;;  %306 = vxpose.xlu0.b32.cont [8/16] %v199_v15, 128 }
  0x61   : > { %339 = vxpose.xlu1.b32.cont [9/16] %v204_v16, 128  ;;  %307 = vxpose.xlu0.b32.cont [9/16] %v203_v17, 128  ;;  %v252_v16 = vld [vmem:[%s1182_s2 + $0x288] sm:$0xff]  ;;  %v251_v17 = vld [vmem:[%s1182_s2 + $0x280] sm:$0xff] }
  0x65   : > { %340 = vxpose.xlu1.b32.cont [10/16] %v208_v18, 128  ;;  %308 = vxpose.xlu0.b32.cont [10/16] %v207_v19, 128 }
  0x69   : > { %341 = vxpose.xlu1.b32.cont [11/16] %v212_v20, 128  ;;  %309 = vxpose.xlu0.b32.cont [11/16] %v211_v21, 128  ;;  %v256_v20 = vld [vmem:[%s1182_s2 + $0x2a8] sm:$0xff]  ;;  %v255_v21 = vld [vmem:[%s1182_s2 + $0x2a0] sm:$0xff] }
  0x6d   : > { %342 = vxpose.xlu1.b32.cont [12/16] %v216_v22, 128  ;;  %310 = vxpose.xlu0.b32.cont [12/16] %v215_v23, 128 }
  0x71   : > { %343 = vxpose.xlu1.b32.cont [13/16] %v220_v24, 128  ;;  %311 = vxpose.xlu0.b32.cont [13/16] %v219_v25, 128  ;;  %v260_v24 = vld [vmem:[%s1182_s2 + $0x2c8] sm:$0xff]  ;;  %v259_v25 = vld [vmem:[%s1182_s2 + $0x2c0] sm:$0xff] }
  0x75   : > { %344 = vxpose.xlu1.b32.cont [14/16] %v224_v26, 128  ;;  %312 = vxpose.xlu0.b32.cont [14/16] %v223_v27, 128 }
  0x79   : > { %345 = vxpose.xlu1.b32.cont [15/16] %v228_v28, 128  ;;  %313 = vxpose.xlu0.b32.cont [15/16] %v227_v29, 128  ;;  %v264_v28 = vld [vmem:[%s1182_s2 + $0x2e8] sm:$0xff]  ;;  %v263_v29 = vld [vmem:[%s1182_s2 + $0x2e0] sm:$0xff] }
  0x7d   : > { %346 = vxpose.xlu1.b32.end [16/16] %v232_v30, 128  ;;  %314 = vxpose.xlu0.b32.end [16/16] %v231_v31, 128 }
  0x81   : > { %395 = vxpose.xlu1.b32.start [1/16] %v174_v32, 128  ;;  %363 = vxpose.xlu0.b32.start [1/16] %v173_v33, 128  ;;  %v268_v32 = vld [vmem:[%s1182_s2 + $0x308] sm:$0xff]  ;;  %v267_v33 = vld [vmem:[%s1182_s2 + $0x300] sm:$0xff] }
  0x85   : > { %396 = vxpose.xlu1.b32.cont [2/16] %v178_v34, 128  ;;  %364 = vxpose.xlu0.b32.cont [2/16] %v177_v35, 128 }
  0x89   : > { %397 = vxpose.xlu1.b32.cont [3/16] %v182_v36, 128  ;;  %365 = vxpose.xlu0.b32.cont [3/16] %v181_v37, 128  ;;  %v272_v36 = vld [vmem:[%s1182_s2 + $0x328] sm:$0xff]  ;;  %v271_v37 = vld [vmem:[%s1182_s2 + $0x320] sm:$0xff] }
  0x8d   : > { %398 = vxpose.xlu1.b32.cont [4/16] %v186_v38, 128  ;;  %366 = vxpose.xlu0.b32.cont [4/16] %v185_v39, 128 }
  0x91   : > { %399 = vxpose.xlu1.b32.cont [5/16] %v190_v40, 128  ;;  %367 = vxpose.xlu0.b32.cont [5/16] %v189_v41, 128  ;;  %v276_v40 = vld [vmem:[%s1182_s2 + $0x348] sm:$0xff]  ;;  %v275_v41 = vld [vmem:[%s1182_s2 + $0x340] sm:$0xff] }
  0x95   : > { %400 = vxpose.xlu1.b32.cont [6/16] %v194_v42, 128  ;;  %368 = vxpose.xlu0.b32.cont [6/16] %v193_v43, 128 }
  0x99   : > { %401 = vxpose.xlu1.b32.cont [7/16] %v198_v44, 128  ;;  %369 = vxpose.xlu0.b32.cont [7/16] %v197_v45, 128  ;;  %v280_v44 = vld [vmem:[%s1182_s2 + $0x368] sm:$0xff]  ;;  %v279_v45 = vld [vmem:[%s1182_s2 + $0x360] sm:$0xff] }
  0x9d   : > { %402 = vxpose.xlu1.b32.cont [8/16] %v202_v46, 128  ;;  %370 = vxpose.xlu0.b32.cont [8/16] %v201_v47, 128 }
  0xa1   : > { %403 = vxpose.xlu1.b32.cont [9/16] %v206_v48, 128  ;;  %371 = vxpose.xlu0.b32.cont [9/16] %v205_v49, 128  ;;  %v284_v48 = vld [vmem:[%s1182_s2 + $0x388] sm:$0xff]  ;;  %v283_v49 = vld [vmem:[%s1182_s2 + $0x380] sm:$0xff] }
  0xa5   : > { %404 = vxpose.xlu1.b32.cont [10/16] %v210_v50, 128  ;;  %372 = vxpose.xlu0.b32.cont [10/16] %v209_v51, 128 }
  0xa9   : > { %405 = vxpose.xlu1.b32.cont [11/16] %v214_v52, 128  ;;  %373 = vxpose.xlu0.b32.cont [11/16] %v213_v53, 128  ;;  %v288_v52 = vld [vmem:[%s1182_s2 + $0x3a8] sm:$0xff]  ;;  %v287_v53 = vld [vmem:[%s1182_s2 + $0x3a0] sm:$0xff] }
  0xad   : > { %406 = vxpose.xlu1.b32.cont [12/16] %v218_v54, 128  ;;  %374 = vxpose.xlu0.b32.cont [12/16] %v217_v55, 128 }
  0xb1   : > { %407 = vxpose.xlu1.b32.cont [13/16] %v222_v56, 128  ;;  %375 = vxpose.xlu0.b32.cont [13/16] %v221_v57, 128  ;;  %v292_v56 = vld [vmem:[%s1182_s2 + $0x3c8] sm:$0xff]  ;;  %v291_v57 = vld [vmem:[%s1182_s2 + $0x3c0] sm:$0xff] }
  0xb5   : > { %408 = vxpose.xlu1.b32.cont [14/16] %v226_v58, 128  ;;  %376 = vxpose.xlu0.b32.cont [14/16] %v225_v59, 128 }
  0xb9   : > { %409 = vxpose.xlu1.b32.cont [15/16] %v230_v60, 128  ;;  %377 = vxpose.xlu0.b32.cont [15/16] %v229_v61, 128  ;;  %v296_v60 = vld [vmem:[%s1182_s2 + $0x3e8] sm:$0xff]  ;;  %v295_v61 = vld [vmem:[%s1182_s2 + $0x3e0] sm:$0xff] }
  0xbd   : > { %410 = vxpose.xlu1.b32.end [16/16] %v234_v62, 128  ;;  %378 = vxpose.xlu0.b32.end [16/16] %v233_v63, 128 }
  0xc1   : > { %459 = vxpose.xlu1.b32.start [1/16] %v236_v0, 128  ;;  %v347_v2 = vpop.trf.xlu1  ;;  %427 = vxpose.xlu0.b32.start [1/16] %v235_v1, 128  ;;  %v315_v3 = vpop.trf.xlu0  ;;  %v238_v0 = vld [vmem:[%s1182_s2 + $0x218] sm:$0xff]  ;;  %v237_v1 = vld [vmem:[%s1182_s2 + $0x210] sm:$0xff] }
  0xc2   : > { %587 = vst [vmem:[%s1256_s21 + $0x100] sm:$0xff] %v347_v2  ;;  %555 = vst [vmem:[%s1256_s21] sm:$0xff] %v315_v3 }
  0xc5   : > { %460 = vxpose.xlu1.b32.cont [2/16] %v240_v4, 128  ;;  %v348_v6 = vpop.trf.xlu1  ;;  %428 = vxpose.xlu0.b32.cont [2/16] %v239_v5, 128  ;;  %v316_v7 = vpop.trf.xlu0  ;;  %v242_v4 = vld [vmem:[%s1182_s2 + $0x238] sm:$0xff]  ;;  %v241_v5 = vld [vmem:[%s1182_s2 + $0x230] sm:$0xff] }
  0xc6   : > { %589 = vst [vmem:[%s1256_s21 + $0x110] sm:$0xff] %v348_v6  ;;  %557 = vst [vmem:[%s1256_s21 + $0x10] sm:$0xff] %v316_v7 }
  0xc9   : > { %461 = vxpose.xlu1.b32.cont [3/16] %v244_v8, 128  ;;  %v349_v10 = vpop.trf.xlu1  ;;  %429 = vxpose.xlu0.b32.cont [3/16] %v243_v9, 128  ;;  %v317_v11 = vpop.trf.xlu0  ;;  %v246_v8 = vld [vmem:[%s1182_s2 + $0x258] sm:$0xff]  ;;  %v245_v9 = vld [vmem:[%s1182_s2 + $0x250] sm:$0xff] }
  0xca   : > { %591 = vst [vmem:[%s1256_s21 + $0x120] sm:$0xff] %v349_v10  ;;  %559 = vst [vmem:[%s1256_s21 + $0x20] sm:$0xff] %v317_v11 }
  0xcd   : > { %462 = vxpose.xlu1.b32.cont [4/16] %v248_v12, 128  ;;  %v350_v14 = vpop.trf.xlu1  ;;  %430 = vxpose.xlu0.b32.cont [4/16] %v247_v13, 128  ;;  %v318_v15 = vpop.trf.xlu0  ;;  %v250_v12 = vld [vmem:[%s1182_s2 + $0x278] sm:$0xff]  ;;  %v249_v13 = vld [vmem:[%s1182_s2 + $0x270] sm:$0xff] }
  0xce   : > { %593 = vst [vmem:[%s1256_s21 + $0x130] sm:$0xff] %v350_v14  ;;  %561 = vst [vmem:[%s1256_s21 + $0x30] sm:$0xff] %v318_v15 }
  0xd1   : > { %463 = vxpose.xlu1.b32.cont [5/16] %v252_v16, 128  ;;  %v351_v18 = vpop.trf.xlu1  ;;  %431 = vxpose.xlu0.b32.cont [5/16] %v251_v17, 128  ;;  %v319_v19 = vpop.trf.xlu0  ;;  %v254_v16 = vld [vmem:[%s1182_s2 + $0x298] sm:$0xff]  ;;  %v253_v17 = vld [vmem:[%s1182_s2 + $0x290] sm:$0xff] }
  0xd2   : > { %595 = vst [vmem:[%s1256_s21 + $0x140] sm:$0xff] %v351_v18  ;;  %563 = vst [vmem:[%s1256_s21 + $0x40] sm:$0xff] %v319_v19 }
  0xd5   : > { %464 = vxpose.xlu1.b32.cont [6/16] %v256_v20, 128  ;;  %v352_v22 = vpop.trf.xlu1  ;;  %432 = vxpose.xlu0.b32.cont [6/16] %v255_v21, 128  ;;  %v320_v23 = vpop.trf.xlu0  ;;  %v258_v20 = vld [vmem:[%s1182_s2 + $0x2b8] sm:$0xff]  ;;  %v257_v21 = vld [vmem:[%s1182_s2 + $0x2b0] sm:$0xff] }
  0xd6   : > { %597 = vst [vmem:[%s1256_s21 + $0x150] sm:$0xff] %v352_v22  ;;  %565 = vst [vmem:[%s1256_s21 + $0x50] sm:$0xff] %v320_v23 }
  0xd9   : > { %465 = vxpose.xlu1.b32.cont [7/16] %v260_v24, 128  ;;  %v353_v26 = vpop.trf.xlu1  ;;  %433 = vxpose.xlu0.b32.cont [7/16] %v259_v25, 128  ;;  %v321_v27 = vpop.trf.xlu0  ;;  %v262_v24 = vld [vmem:[%s1182_s2 + $0x2d8] sm:$0xff]  ;;  %v261_v25 = vld [vmem:[%s1182_s2 + $0x2d0] sm:$0xff] }
  0xda   : > { %599 = vst [vmem:[%s1256_s21 + $0x160] sm:$0xff] %v353_v26  ;;  %567 = vst [vmem:[%s1256_s21 + $0x60] sm:$0xff] %v321_v27 }
  0xdd   : > { %466 = vxpose.xlu1.b32.cont [8/16] %v264_v28, 128  ;;  %v354_v30 = vpop.trf.xlu1  ;;  %434 = vxpose.xlu0.b32.cont [8/16] %v263_v29, 128  ;;  %v322_v31 = vpop.trf.xlu0  ;;  %v266_v28 = vld [vmem:[%s1182_s2 + $0x2f8] sm:$0xff]  ;;  %v265_v29 = vld [vmem:[%s1182_s2 + $0x2f0] sm:$0xff] }
  0xde   : > { %601 = vst [vmem:[%s1256_s21 + $0x170] sm:$0xff] %v354_v30  ;;  %569 = vst [vmem:[%s1256_s21 + $0x70] sm:$0xff] %v322_v31 }
  0xe1   : > { %467 = vxpose.xlu1.b32.cont [9/16] %v268_v32, 128  ;;  %v355_v34 = vpop.trf.xlu1  ;;  %435 = vxpose.xlu0.b32.cont [9/16] %v267_v33, 128  ;;  %v323_v35 = vpop.trf.xlu0  ;;  %v270_v32 = vld [vmem:[%s1182_s2 + $0x318] sm:$0xff]  ;;  %v269_v33 = vld [vmem:[%s1182_s2 + $0x310] sm:$0xff] }
  0xe2   : > { %603 = vst [vmem:[%s1256_s21 + $0x180] sm:$0xff] %v355_v34  ;;  %571 = vst [vmem:[%s1256_s21 + $0x80] sm:$0xff] %v323_v35 }
  0xe5   : > { %468 = vxpose.xlu1.b32.cont [10/16] %v272_v36, 128  ;;  %v356_v38 = vpop.trf.xlu1  ;;  %436 = vxpose.xlu0.b32.cont [10/16] %v271_v37, 128  ;;  %v324_v39 = vpop.trf.xlu0  ;;  %v274_v36 = vld [vmem:[%s1182_s2 + $0x338] sm:$0xff]  ;;  %v273_v37 = vld [vmem:[%s1182_s2 + $0x330] sm:$0xff] }
  0xe6   : > { %605 = vst [vmem:[%s1256_s21 + $0x190] sm:$0xff] %v356_v38  ;;  %573 = vst [vmem:[%s1256_s21 + $0x90] sm:$0xff] %v324_v39 }
  0xe9   : > { %469 = vxpose.xlu1.b32.cont [11/16] %v276_v40, 128  ;;  %v357_v42 = vpop.trf.xlu1  ;;  %437 = vxpose.xlu0.b32.cont [11/16] %v275_v41, 128  ;;  %v325_v43 = vpop.trf.xlu0  ;;  %v278_v40 = vld [vmem:[%s1182_s2 + $0x358] sm:$0xff]  ;;  %v277_v41 = vld [vmem:[%s1182_s2 + $0x350] sm:$0xff] }
  0xea   : > { %607 = vst [vmem:[%s1256_s21 + $0x1a0] sm:$0xff] %v357_v42  ;;  %575 = vst [vmem:[%s1256_s21 + $0xa0] sm:$0xff] %v325_v43 }
  0xed   : > { %470 = vxpose.xlu1.b32.cont [12/16] %v280_v44, 128  ;;  %v358_v46 = vpop.trf.xlu1  ;;  %438 = vxpose.xlu0.b32.cont [12/16] %v279_v45, 128  ;;  %v326_v47 = vpop.trf.xlu0  ;;  %v282_v44 = vld [vmem:[%s1182_s2 + $0x378] sm:$0xff]  ;;  %v281_v45 = vld [vmem:[%s1182_s2 + $0x370] sm:$0xff] }
  0xee   : > { %609 = vst [vmem:[%s1256_s21 + $0x1b0] sm:$0xff] %v358_v46  ;;  %577 = vst [vmem:[%s1256_s21 + $0xb0] sm:$0xff] %v326_v47 }
  0xf1   : > { %471 = vxpose.xlu1.b32.cont [13/16] %v284_v48, 128  ;;  %v359_v50 = vpop.trf.xlu1  ;;  %439 = vxpose.xlu0.b32.cont [13/16] %v283_v49, 128  ;;  %v327_v51 = vpop.trf.xlu0  ;;  %v286_v48 = vld [vmem:[%s1182_s2 + $0x398] sm:$0xff]  ;;  %v285_v49 = vld [vmem:[%s1182_s2 + $0x390] sm:$0xff] }
  0xf2   : > { %611 = vst [vmem:[%s1256_s21 + $0x1c0] sm:$0xff] %v359_v50  ;;  %579 = vst [vmem:[%s1256_s21 + $0xc0] sm:$0xff] %v327_v51 }
  0xf5   : > { %472 = vxpose.xlu1.b32.cont [14/16] %v288_v52, 128  ;;  %v360_v54 = vpop.trf.xlu1  ;;  %440 = vxpose.xlu0.b32.cont [14/16] %v287_v53, 128  ;;  %v328_v55 = vpop.trf.xlu0  ;;  %v290_v52 = vld [vmem:[%s1182_s2 + $0x3b8] sm:$0xff]  ;;  %v289_v53 = vld [vmem:[%s1182_s2 + $0x3b0] sm:$0xff] }
  0xf6   : > { %613 = vst [vmem:[%s1256_s21 + $0x1d0] sm:$0xff] %v360_v54  ;;  %581 = vst [vmem:[%s1256_s21 + $0xd0] sm:$0xff] %v328_v55 }
  0xf9   : > { %473 = vxpose.xlu1.b32.cont [15/16] %v292_v56, 128  ;;  %v361_v58 = vpop.trf.xlu1  ;;  %441 = vxpose.xlu0.b32.cont [15/16] %v291_v57, 128  ;;  %v329_v59 = vpop.trf.xlu0  ;;  %v294_v56 = vld [vmem:[%s1182_s2 + $0x3d8] sm:$0xff]  ;;  %v293_v57 = vld [vmem:[%s1182_s2 + $0x3d0] sm:$0xff] }
  0xfa   : > { %615 = vst [vmem:[%s1256_s21 + $0x1e0] sm:$0xff] %v361_v58  ;;  %583 = vst [vmem:[%s1256_s21 + $0xe0] sm:$0xff] %v329_v59 }
  0xfd   : > { %474 = vxpose.xlu1.b32.end [16/16] %v296_v60, 128  ;;  %v362_v62 = vpop.trf.xlu1  ;;  %442 = vxpose.xlu0.b32.end [16/16] %v295_v61, 128  ;;  %v330_v63 = vpop.trf.xlu0  ;;  %v298_v60 = vld [vmem:[%s1182_s2 + $0x3f8] sm:$0xff]  ;;  %v297_v61 = vld [vmem:[%s1182_s2 + $0x3f0] sm:$0xff] }
  0xfe   : > { %617 = vst [vmem:[%s1256_s21 + $0x1f0] sm:$0xff] %v362_v62  ;;  %585 = vst [vmem:[%s1256_s21 + $0xf0] sm:$0xff] %v330_v63 }
 0x101   : > { %523 = vxpose.xlu1.b32.start [1/16] %v238_v0, 128  ;;  %v411_v2 = vpop.trf.xlu1  ;;  %491 = vxpose.xlu0.b32.start [1/16] %v237_v1, 128  ;;  %v379_v3 = vpop.trf.xlu0 }
 0x102   : > { %651 = vst [vmem:[%s1256_s21 + $0x300] sm:$0xff] %v411_v2  ;;  %619 = vst [vmem:[%s1256_s21 + $0x200] sm:$0xff] %v379_v3 }
 0x105   : > { %524 = vxpose.xlu1.b32.cont [2/16] %v242_v4, 128  ;;  %v412_v6 = vpop.trf.xlu1  ;;  %492 = vxpose.xlu0.b32.cont [2/16] %v241_v5, 128  ;;  %v380_v7 = vpop.trf.xlu0 }
 0x106   : > { %653 = vst [vmem:[%s1256_s21 + $0x310] sm:$0xff] %v412_v6  ;;  %621 = vst [vmem:[%s1256_s21 + $0x210] sm:$0xff] %v380_v7 }
 0x109   : > { %525 = vxpose.xlu1.b32.cont [3/16] %v246_v8, 128  ;;  %v413_v10 = vpop.trf.xlu1  ;;  %493 = vxpose.xlu0.b32.cont [3/16] %v245_v9, 128  ;;  %v381_v11 = vpop.trf.xlu0 }
 0x10a   : > { %655 = vst [vmem:[%s1256_s21 + $0x320] sm:$0xff] %v413_v10  ;;  %623 = vst [vmem:[%s1256_s21 + $0x220] sm:$0xff] %v381_v11 }
 0x10d   : > { %526 = vxpose.xlu1.b32.cont [4/16] %v250_v12, 128  ;;  %v414_v14 = vpop.trf.xlu1  ;;  %494 = vxpose.xlu0.b32.cont [4/16] %v249_v13, 128  ;;  %v382_v15 = vpop.trf.xlu0 }
 0x10e   : > { %657 = vst [vmem:[%s1256_s21 + $0x330] sm:$0xff] %v414_v14  ;;  %625 = vst [vmem:[%s1256_s21 + $0x230] sm:$0xff] %v382_v15 }
 0x111   : > { %527 = vxpose.xlu1.b32.cont [5/16] %v254_v16, 128  ;;  %v415_v18 = vpop.trf.xlu1  ;;  %495 = vxpose.xlu0.b32.cont [5/16] %v253_v17, 128  ;;  %v383_v19 = vpop.trf.xlu0 }
 0x112   : > { %659 = vst [vmem:[%s1256_s21 + $0x340] sm:$0xff] %v415_v18  ;;  %627 = vst [vmem:[%s1256_s21 + $0x240] sm:$0xff] %v383_v19 }
 0x115   : > { %528 = vxpose.xlu1.b32.cont [6/16] %v258_v20, 128  ;;  %v416_v22 = vpop.trf.xlu1  ;;  %496 = vxpose.xlu0.b32.cont [6/16] %v257_v21, 128  ;;  %v384_v23 = vpop.trf.xlu0 }
 0x116   : > { %661 = vst [vmem:[%s1256_s21 + $0x350] sm:$0xff] %v416_v22  ;;  %629 = vst [vmem:[%s1256_s21 + $0x250] sm:$0xff] %v384_v23 }
 0x119   : > { %529 = vxpose.xlu1.b32.cont [7/16] %v262_v24, 128  ;;  %v417_v26 = vpop.trf.xlu1  ;;  %497 = vxpose.xlu0.b32.cont [7/16] %v261_v25, 128  ;;  %v385_v27 = vpop.trf.xlu0 }
 0x11a   : > { %663 = vst [vmem:[%s1256_s21 + $0x360] sm:$0xff] %v417_v26  ;;  %631 = vst [vmem:[%s1256_s21 + $0x260] sm:$0xff] %v385_v27 }
 0x11d   : > { %530 = vxpose.xlu1.b32.cont [8/16] %v266_v28, 128  ;;  %v418_v30 = vpop.trf.xlu1  ;;  %498 = vxpose.xlu0.b32.cont [8/16] %v265_v29, 128  ;;  %v386_v31 = vpop.trf.xlu0 }
 0x11e   : > { %665 = vst [vmem:[%s1256_s21 + $0x370] sm:$0xff] %v418_v30  ;;  %633 = vst [vmem:[%s1256_s21 + $0x270] sm:$0xff] %v386_v31 }
 0x121   : > { %531 = vxpose.xlu1.b32.cont [9/16] %v270_v32, 128  ;;  %v419_v34 = vpop.trf.xlu1  ;;  %499 = vxpose.xlu0.b32.cont [9/16] %v269_v33, 128  ;;  %v387_v35 = vpop.trf.xlu0 }
 0x122   : > { %667 = vst [vmem:[%s1256_s21 + $0x380] sm:$0xff] %v419_v34  ;;  %635 = vst [vmem:[%s1256_s21 + $0x280] sm:$0xff] %v387_v35 }
 0x125   : > { %532 = vxpose.xlu1.b32.cont [10/16] %v274_v36, 128  ;;  %v420_v38 = vpop.trf.xlu1  ;;  %500 = vxpose.xlu0.b32.cont [10/16] %v273_v37, 128  ;;  %v388_v39 = vpop.trf.xlu0 }
 0x126   : > { %669 = vst [vmem:[%s1256_s21 + $0x390] sm:$0xff] %v420_v38  ;;  %637 = vst [vmem:[%s1256_s21 + $0x290] sm:$0xff] %v388_v39 }
 0x129   : > { %533 = vxpose.xlu1.b32.cont [11/16] %v278_v40, 128  ;;  %v421_v42 = vpop.trf.xlu1  ;;  %501 = vxpose.xlu0.b32.cont [11/16] %v277_v41, 128  ;;  %v389_v43 = vpop.trf.xlu0 }
 0x12a   : > { %671 = vst [vmem:[%s1256_s21 + $0x3a0] sm:$0xff] %v421_v42  ;;  %639 = vst [vmem:[%s1256_s21 + $0x2a0] sm:$0xff] %v389_v43 }
 0x12d   : > { %534 = vxpose.xlu1.b32.cont [12/16] %v282_v44, 128  ;;  %v422_v46 = vpop.trf.xlu1  ;;  %502 = vxpose.xlu0.b32.cont [12/16] %v281_v45, 128  ;;  %v390_v47 = vpop.trf.xlu0 }
 0x12e   : > { %673 = vst [vmem:[%s1256_s21 + $0x3b0] sm:$0xff] %v422_v46  ;;  %641 = vst [vmem:[%s1256_s21 + $0x2b0] sm:$0xff] %v390_v47 }
 0x131   : > { %535 = vxpose.xlu1.b32.cont [13/16] %v286_v48, 128  ;;  %v423_v50 = vpop.trf.xlu1  ;;  %503 = vxpose.xlu0.b32.cont [13/16] %v285_v49, 128  ;;  %v391_v51 = vpop.trf.xlu0 }
 0x132   : > { %675 = vst [vmem:[%s1256_s21 + $0x3c0] sm:$0xff] %v423_v50  ;;  %643 = vst [vmem:[%s1256_s21 + $0x2c0] sm:$0xff] %v391_v51 }
 0x135   : > { %536 = vxpose.xlu1.b32.cont [14/16] %v290_v52, 128  ;;  %v424_v54 = vpop.trf.xlu1  ;;  %504 = vxpose.xlu0.b32.cont [14/16] %v289_v53, 128  ;;  %v392_v55 = vpop.trf.xlu0 }
 0x136   : > { %677 = vst [vmem:[%s1256_s21 + $0x3d0] sm:$0xff] %v424_v54  ;;  %645 = vst [vmem:[%s1256_s21 + $0x2d0] sm:$0xff] %v392_v55 }
 0x139   : > { %537 = vxpose.xlu1.b32.cont [15/16] %v294_v56, 128  ;;  %v425_v58 = vpop.trf.xlu1  ;;  %505 = vxpose.xlu0.b32.cont [15/16] %v293_v57, 128  ;;  %v393_v59 = vpop.trf.xlu0 }
 0x13a   : > { %679 = vst [vmem:[%s1256_s21 + $0x3e0] sm:$0xff] %v425_v58  ;;  %647 = vst [vmem:[%s1256_s21 + $0x2e0] sm:$0xff] %v393_v59 }
 0x13d   : > { %538 = vxpose.xlu1.b32.end [16/16] %v298_v60, 128  ;;  %v426_v62 = vpop.trf.xlu1  ;;  %506 = vxpose.xlu0.b32.end [16/16] %v297_v61, 128  ;;  %v394_v63 = vpop.trf.xlu0 }
 0x13e   : > { %681 = vst [vmem:[%s1256_s21 + $0x3f0] sm:$0xff] %v426_v62  ;;  %649 = vst [vmem:[%s1256_s21 + $0x2f0] sm:$0xff] %v394_v63 }
 0x141   : > { %v475_v0 = vpop.trf.xlu1  ;;  %v443_v1 = vpop.trf.xlu0 }
 0x142   : > { %588 = vst [vmem:[%s1256_s21 + $0x108] sm:$0xff] %v475_v0  ;;  %556 = vst [vmem:[%s1256_s21 + $0x8] sm:$0xff] %v443_v1 }
 0x145   : > { %v476_v2 = vpop.trf.xlu1  ;;  %v444_v3 = vpop.trf.xlu0 }
 0x146   : > { %590 = vst [vmem:[%s1256_s21 + $0x118] sm:$0xff] %v476_v2  ;;  %558 = vst [vmem:[%s1256_s21 + $0x18] sm:$0xff] %v444_v3 }
 0x149   : > { %v477_v4 = vpop.trf.xlu1  ;;  %v445_v5 = vpop.trf.xlu0 }
 0x14a   : > { %592 = vst [vmem:[%s1256_s21 + $0x128] sm:$0xff] %v477_v4  ;;  %560 = vst [vmem:[%s1256_s21 + $0x28] sm:$0xff] %v445_v5 }
 0x14d   : > { %v478_v6 = vpop.trf.xlu1  ;;  %v446_v7 = vpop.trf.xlu0 }
 0x14e   : > { %594 = vst [vmem:[%s1256_s21 + $0x138] sm:$0xff] %v478_v6  ;;  %562 = vst [vmem:[%s1256_s21 + $0x38] sm:$0xff] %v446_v7 }
 0x151   : > { %v479_v8 = vpop.trf.xlu1  ;;  %v447_v9 = vpop.trf.xlu0 }
 0x152   : > { %596 = vst [vmem:[%s1256_s21 + $0x148] sm:$0xff] %v479_v8  ;;  %564 = vst [vmem:[%s1256_s21 + $0x48] sm:$0xff] %v447_v9 }
 0x155   : > { %v480_v10 = vpop.trf.xlu1  ;;  %v448_v11 = vpop.trf.xlu0 }
 0x156   : > { %598 = vst [vmem:[%s1256_s21 + $0x158] sm:$0xff] %v480_v10  ;;  %566 = vst [vmem:[%s1256_s21 + $0x58] sm:$0xff] %v448_v11 }
 0x159   : > { %v481_v12 = vpop.trf.xlu1  ;;  %v449_v13 = vpop.trf.xlu0 }
 0x15a   : > { %600 = vst [vmem:[%s1256_s21 + $0x168] sm:$0xff] %v481_v12  ;;  %568 = vst [vmem:[%s1256_s21 + $0x68] sm:$0xff] %v449_v13 }
 0x15d   : > { %v482_v14 = vpop.trf.xlu1  ;;  %v450_v15 = vpop.trf.xlu0 }
 0x15e   : > { %602 = vst [vmem:[%s1256_s21 + $0x178] sm:$0xff] %v482_v14  ;;  %570 = vst [vmem:[%s1256_s21 + $0x78] sm:$0xff] %v450_v15 }
 0x161   : > { %v483_v16 = vpop.trf.xlu1  ;;  %v451_v17 = vpop.trf.xlu0 }
 0x162   : > { %604 = vst [vmem:[%s1256_s21 + $0x188] sm:$0xff] %v483_v16  ;;  %572 = vst [vmem:[%s1256_s21 + $0x88] sm:$0xff] %v451_v17 }
 0x165   : > { %v484_v18 = vpop.trf.xlu1  ;;  %v452_v19 = vpop.trf.xlu0 }
 0x166   : > { %606 = vst [vmem:[%s1256_s21 + $0x198] sm:$0xff] %v484_v18  ;;  %574 = vst [vmem:[%s1256_s21 + $0x98] sm:$0xff] %v452_v19 }
 0x169   : > { %v485_v20 = vpop.trf.xlu1  ;;  %v453_v21 = vpop.trf.xlu0 }
 0x16a   : > { %608 = vst [vmem:[%s1256_s21 + $0x1a8] sm:$0xff] %v485_v20  ;;  %576 = vst [vmem:[%s1256_s21 + $0xa8] sm:$0xff] %v453_v21 }
 0x16d   : > { %v486_v22 = vpop.trf.xlu1  ;;  %v454_v23 = vpop.trf.xlu0 }
 0x16e   : > { %610 = vst [vmem:[%s1256_s21 + $0x1b8] sm:$0xff] %v486_v22  ;;  %578 = vst [vmem:[%s1256_s21 + $0xb8] sm:$0xff] %v454_v23 }
 0x171   : > { %v487_v24 = vpop.trf.xlu1  ;;  %v455_v25 = vpop.trf.xlu0 }
 0x172   : > { %612 = vst [vmem:[%s1256_s21 + $0x1c8] sm:$0xff] %v487_v24  ;;  %580 = vst [vmem:[%s1256_s21 + $0xc8] sm:$0xff] %v455_v25 }
 0x175   : > { %v488_v26 = vpop.trf.xlu1  ;;  %v456_v27 = vpop.trf.xlu0 }
 0x176   : > { %614 = vst [vmem:[%s1256_s21 + $0x1d8] sm:$0xff] %v488_v26  ;;  %582 = vst [vmem:[%s1256_s21 + $0xd8] sm:$0xff] %v456_v27 }
 0x179   : > { %v489_v28 = vpop.trf.xlu1  ;;  %v457_v29 = vpop.trf.xlu0 }
 0x17a   : > { %616 = vst [vmem:[%s1256_s21 + $0x1e8] sm:$0xff] %v489_v28  ;;  %584 = vst [vmem:[%s1256_s21 + $0xe8] sm:$0xff] %v457_v29 }
 0x17d   : > { %v490_v30 = vpop.trf.xlu1  ;;  %v458_v31 = vpop.trf.xlu0 }
 0x17e   : > { %618 = vst [vmem:[%s1256_s21 + $0x1f8] sm:$0xff] %v490_v30  ;;  %586 = vst [vmem:[%s1256_s21 + $0xf8] sm:$0xff] %v458_v31 }
 0x181   : > { %v539_v32 = vpop.trf.xlu1  ;;  %v507_v33 = vpop.trf.xlu0 }
 0x182   : > { %652 = vst [vmem:[%s1256_s21 + $0x308] sm:$0xff] %v539_v32  ;;  %620 = vst [vmem:[%s1256_s21 + $0x208] sm:$0xff] %v507_v33 }
 0x185   : > { %v540_v34 = vpop.trf.xlu1  ;;  %v508_v35 = vpop.trf.xlu0 }
 0x186   : > { %654 = vst [vmem:[%s1256_s21 + $0x318] sm:$0xff] %v540_v34  ;;  %622 = vst [vmem:[%s1256_s21 + $0x218] sm:$0xff] %v508_v35 }
 0x189   : > { %v541_v36 = vpop.trf.xlu1  ;;  %v509_v37 = vpop.trf.xlu0 }
 0x18a   : > { %656 = vst [vmem:[%s1256_s21 + $0x328] sm:$0xff] %v541_v36  ;;  %624 = vst [vmem:[%s1256_s21 + $0x228] sm:$0xff] %v509_v37 }
 0x18d   : > { %v542_v38 = vpop.trf.xlu1  ;;  %v510_v39 = vpop.trf.xlu0 }
 0x18e   : > { %658 = vst [vmem:[%s1256_s21 + $0x338] sm:$0xff] %v542_v38  ;;  %626 = vst [vmem:[%s1256_s21 + $0x238] sm:$0xff] %v510_v39 }
 0x191   : > { %v543_v40 = vpop.trf.xlu1  ;;  %v511_v41 = vpop.trf.xlu0 }
 0x192   : > { %660 = vst [vmem:[%s1256_s21 + $0x348] sm:$0xff] %v543_v40  ;;  %628 = vst [vmem:[%s1256_s21 + $0x248] sm:$0xff] %v511_v41 }
 0x195   : > { %v544_v42 = vpop.trf.xlu1  ;;  %v512_v43 = vpop.trf.xlu0 }
 0x196   : > { %662 = vst [vmem:[%s1256_s21 + $0x358] sm:$0xff] %v544_v42  ;;  %630 = vst [vmem:[%s1256_s21 + $0x258] sm:$0xff] %v512_v43 }
 0x199   : > { %v545_v44 = vpop.trf.xlu1  ;;  %v513_v45 = vpop.trf.xlu0 }
 0x19a   : > { %664 = vst [vmem:[%s1256_s21 + $0x368] sm:$0xff] %v545_v44  ;;  %632 = vst [vmem:[%s1256_s21 + $0x268] sm:$0xff] %v513_v45 }
 0x19d   : > { %v546_v46 = vpop.trf.xlu1  ;;  %v514_v47 = vpop.trf.xlu0 }
 0x19e   : > { %666 = vst [vmem:[%s1256_s21 + $0x378] sm:$0xff] %v546_v46  ;;  %634 = vst [vmem:[%s1256_s21 + $0x278] sm:$0xff] %v514_v47 }
 0x1a1   : > { %v547_v48 = vpop.trf.xlu1  ;;  %v515_v49 = vpop.trf.xlu0 }
 0x1a2   : > { %668 = vst [vmem:[%s1256_s21 + $0x388] sm:$0xff] %v547_v48  ;;  %636 = vst [vmem:[%s1256_s21 + $0x288] sm:$0xff] %v515_v49 }
 0x1a5   : > { %v548_v50 = vpop.trf.xlu1  ;;  %v516_v51 = vpop.trf.xlu0 }
 0x1a6   : > { %670 = vst [vmem:[%s1256_s21 + $0x398] sm:$0xff] %v548_v50  ;;  %638 = vst [vmem:[%s1256_s21 + $0x298] sm:$0xff] %v516_v51 }
 0x1a9   : > { %v549_v52 = vpop.trf.xlu1  ;;  %v517_v53 = vpop.trf.xlu0 }
 0x1aa   : > { %672 = vst [vmem:[%s1256_s21 + $0x3a8] sm:$0xff] %v549_v52  ;;  %640 = vst [vmem:[%s1256_s21 + $0x2a8] sm:$0xff] %v517_v53 }
 0x1ad   : > { %v550_v54 = vpop.trf.xlu1  ;;  %v518_v55 = vpop.trf.xlu0 }
 0x1ae   : > { %674 = vst [vmem:[%s1256_s21 + $0x3b8] sm:$0xff] %v550_v54  ;;  %642 = vst [vmem:[%s1256_s21 + $0x2b8] sm:$0xff] %v518_v55 }
 0x1b1   : > { %v551_v56 = vpop.trf.xlu1  ;;  %v519_v57 = vpop.trf.xlu0 }
 0x1b2   : > { %676 = vst [vmem:[%s1256_s21 + $0x3c8] sm:$0xff] %v551_v56  ;;  %644 = vst [vmem:[%s1256_s21 + $0x2c8] sm:$0xff] %v519_v57 }
 0x1b5   : > { %v552_v58 = vpop.trf.xlu1  ;;  %v520_v59 = vpop.trf.xlu0 }
 0x1b6   : > { %678 = vst [vmem:[%s1256_s21 + $0x3d8] sm:$0xff] %v552_v58  ;;  %646 = vst [vmem:[%s1256_s21 + $0x2d8] sm:$0xff] %v520_v59 }
 0x1b9   : > { %v553_v60 = vpop.trf.xlu1  ;;  %v521_v61 = vpop.trf.xlu0 }
 0x1ba   : > { %680 = vst [vmem:[%s1256_s21 + $0x3e8] sm:$0xff] %v553_v60  ;;  %648 = vst [vmem:[%s1256_s21 + $0x2e8] sm:$0xff] %v521_v61 }
 0x1bd   : > { %v554_v62 = vpop.trf.xlu1  ;;  %v522_v63 = vpop.trf.xlu0 }
 0x1be   : > { %682 = vst [vmem:[%s1256_s21 + $0x3f8] sm:$0xff] %v554_v62  ;;  %650 = vst [vmem:[%s1256_s21 + $0x2f8] sm:$0xff] %v522_v63 }
 0x1bf   : > { %944 = shalt.err (!%p941_p4)
}
 0x1c0   : > { %s945_s29 = scalar_lea.hbm %s1452_s9, 16384  ;;  %s949_s21 = scalar_lea.hbm %s1511_s1, 65536 }
 0x1c1   : > { %p946_p6 = scmp.ne.s32.totalorder %s1452_s9, %s945_s29  ;;  %p950_p1 = scmp.lt.u32.totalorder %s1452_s9, %s1511_s1 }
 0x1c2   : > { %p951_p3 = scmp.lt.u32.totalorder %s949_s21, %s945_s29  ;;  %p953_p8 = scmp.lt.u32.totalorder %s945_s29, %s1452_s9 }
 0x1c3   : > { %p947_p7 = pnand %p946_p6, %p1519_p9 }
 0x1c4   : > { %p952_p5 = por %p951_p3, %p950_p1 }
 0x1c5   : > { %p948_p10 = pneg %p947_p7 }
 0x1c6   : > { %p954_p12 = por %p953_p8, %p952_p5 }
 0x1c8   : > { %p955_p0 = pnand %p954_p12, %p948_p10 }
 0x1ca   : > { %958 = shalt.err (!%p955_p0)
}
 0x1cb   : > { %s1036_s18 = smov 256   ;;  %s1037_s23 = smov 16  }
 0x1cc   : > { %820 = dma.vmem_to_hbm [thread:$0]  (%p1519_p9), %s1454_s26, 16384, %s1452_s9, %s684_s10, %s1036_s18, %s1036_s18, %s1037_s23  }
 0x1cd PF: > { %p831_p11 = scmp.ge.s32.totalorder %s1029_s13, 2  ;;  %s717_s4 = sand.u32 1, %s1001_s6  }
 0x1ce   : > { %p1520_p13 = scmp.ne.s32.totalorder %s1516_s25, 0  ;;  %s718_s5 = scalar_lea.sflag [#allocation4], %s717_s4 }
 0x1d0   : > { %p827_p2 = pnand %p831_p11, %p1520_p13 }
 0x1d2   : > { %996 = dma.done.wait (!%p827_p2), %s718_s5, 16384  }
 0x1d3   : > { %998 = vsyncadd (!%p827_p2), %s718_s5, 4294950912  ;;  %s17_s13 = sadd.s32 1, %s1029_s13   ;;  %s1521_s6 = smov %s1005_s7 }
 0x1d4   : > { %p14_p4 = scmp.ge.s32.totalorder %s17_s13, 6   ;;  %s1522_s7 = smov %s1009_s8 }
 0x1d5   : > { %s1523_s8 = smov %s1126_s27  ;;  %s1524_s9 = smov %s1021_s11 }
 0x1d6   : > { %s1525_s10 = smov %s1025_s12  ;;  %s1526_s11 = smov %s1529_s16 }
 0x1d7   : > { %s1527_s12 = smov %s1533_s17  ;;  %16 = sbr.rel (!%p14_p4) target bundleno = 7 (0x7), region = 69 }
 0x1de   :  { %723 = vsyncpa [#allocation3], 1 }
 0x1df   :  { %725 = vsyncpa [#allocation3 + $0x1], 1 }
 0x1e0   :  { %726 = vsyncpa [#allocation4], 1 }
 0x1e1   :  { %728 = vsyncpa [#allocation4 + $0x1], 1 }

</bundles_post_ra>
